<compile_context>
chip_gen: v6e
topology: v6e:2x2x1
jax: 0.10.0
libtpu: 0.0.40
codegen_flags: <defaults>
</compile_context>

<pallas_src>
import functools

import jax
import jax.numpy as jnp
from jax.experimental import pallas as pl
from jax.experimental.pallas import tpu as pltpu

LANE = 128
SUBLANE = 8


def _round_up(x: int, m: int) -> int:
    return ((x + m - 1) // m) * m


# ----------------------------------------------------------------------------
# Kernel: entire dims pipeline fused; intermediates never touch HBM.
# ----------------------------------------------------------------------------
def _mlfpn_fused_kernel(*refs, num_layers: int, out_dim: int, compute_dtype):
    """refs = (x_ref, w0_ref, b0_ref, ..., w{L-1}_ref, b{L-1}_ref, o_ref).

    x_ref:  (TB, D0)             unpadded-K batch tile
    wi_ref: (Kin, Dout_pad)      pre-transposed weights (Kin = D0 for layer 0,
                                 padded D_i otherwise); lane-padded outputs.
    bi_ref: (1, Dout_pad)        f32 biases (added to the f32 accumulator)
    o_ref:  (TB, out_dim)        unpadded output tile
    """
    x_ref = refs[0]
    o_ref = refs[-1]
    wb = refs[1:-1]

    h = x_ref[...]
    for i in range(num_layers):
        w = wb[2 * i][...]
        b = wb[2 * i + 1][...]
        h = jnp.dot(h.astype(compute_dtype), w,
                    preferred_element_type=jnp.float32) + b
        if i < num_layers - 1:
            h = jnp.maximum(h, 0.0)
    if h.shape[-1] != out_dim:
        h = h[:, :out_dim]
    o_ref[...] = h.astype(o_ref.dtype)


# ----------------------------------------------------------------------------
# One-time parameter preparation (padding + cast hoisted out of the call path).
# ----------------------------------------------------------------------------
def _pad_params(params, param_dtype):
    """Zero-pad weights/biases once. Layer-0 weight keeps its true input dim
    (matches the unpadded x tile); later weights pad K to the previous layer's
    padded output dim. Padded lanes stay exactly zero through bias+ReLU."""
    num_layers = len(params)
    dims = [params[0][0].shape[0]] + [w_t.shape[1] for (w_t, _) in params]
    dims_pad = [dims[0]] + [_round_up(d, LANE) for d in dims[1:]]
    flat = []
    for i, (w_t, b) in enumerate(params):
        din, dout = dims[i], dims[i + 1]
        dinp = dims[0] if i == 0 else dims_pad[i]
        doutp = dims_pad[i + 1]
        w_p = jnp.zeros((dinp, doutp), param_dtype).at[:din, :dout].set(
            w_t.astype(param_dtype))
        b_p = jnp.zeros((1, doutp), jnp.float32).at[0, :dout].set(
            b.astype(jnp.float32))
        flat += [w_p, b_p]
    return tuple(flat), tuple(dims), tuple(dims_pad)


def _estimate_vmem_bytes(tb, d0, d_last, dims_pad, param_bytes, act_bytes):
    """Conservative VMEM footprint estimate (weights assumed double-buffered)."""
    num_layers = len(dims_pad) - 1
    w_elems = d0 * dims_pad[1] + sum(
        dims_pad[i] * dims_pad[i + 1] for i in range(1, num_layers))
    b_elems = sum(dims_pad[1:])
    resident = 2 * (w_elems * param_bytes + b_elems * 4)
    streamed = 2 * tb * (d0 + d_last) * act_bytes      # x / out tiles, 2-buffered
    scratch = 3 * tb * max(dims_pad[1:]) * 4           # f32 intermediates
    return resident + streamed + scratch


# ----------------------------------------------------------------------------
# Forward factory: pads params once, returns a jitted forward(fea) callable.
# ----------------------------------------------------------------------------
def make_mlfpn_fc(params, *, tile_b: int = 512, param_dtype=jnp.float32,
                  vmem_budget_bytes: int = 40 * 1024 * 1024):
    flat_params, dims, dims_pad = _pad_params(params, param_dtype)
    num_layers = len(params)
    d0, d_last = dims[0], dims[-1]
    param_bytes = jnp.dtype(param_dtype).itemsize

    def _fwd(fea, *wb):
        B = fea.shape[0]
        act_bytes = jnp.dtype(fea.dtype).itemsize

        # ---- batch tiling ------------------------------------------------
        tb_cap = _round_up(max(int(tile_b), SUBLANE), SUBLANE)
        B_sub = _round_up(B, SUBLANE)
        n_tiles = pl.cdiv(B_sub, tb_cap)
        if n_tiles == 1 and B_sub > SUBLANE:
            n_tiles = 2  # >=2 grid steps so ("parallel",) can use both v7x TCs
        tb = _round_up(pl.cdiv(B_sub, n_tiles), SUBLANE)

        # ---- VMEM budget: shrink the batch tile if it would overflow ------
        while tb > SUBLANE and _estimate_vmem_bytes(
                tb, d0, d_last, dims_pad, param_bytes, act_bytes) > vmem_budget_bytes:
            tb = _round_up(tb // 2, SUBLANE)
        n_tiles = pl.cdiv(B_sub, tb)
        B_pad = n_tiles * tb

        vmem_needed = _estimate_vmem_bytes(tb, d0, d_last, dims_pad,
                                           param_bytes, act_bytes)
        compiler_kwargs = dict(dimension_semantics=("parallel",))
        if vmem_needed > 16 * 1024 * 1024:  # above v5e default scoped VMEM
            compiler_kwargs["vmem_limit_bytes"] = int(
                min(vmem_needed * 5 // 4, 48 * 1024 * 1024))

        # ---- batch padding only (no lane padding of x in HBM) -------------
        x_p = fea if B_pad == B else (
            jnp.zeros((B_pad, d0), fea.dtype).at[:B].set(fea))

        in_specs = [pl.BlockSpec((tb, d0), lambda i: (i, 0))]
        for li in range(num_layers):
            dinp = d0 if li == 0 else dims_pad[li]
            doutp = dims_pad[li + 1]
            in_specs += [
                # Grid-invariant: weights/biases stay VMEM-resident across tiles.
                pl.BlockSpec((dinp, doutp), lambda i: (0, 0)),
                pl.BlockSpec((1, doutp), lambda i: (0, 0)),
            ]

        w_elems = d0 * dims_pad[1] + sum(
            dims_pad[i] * dims_pad[i + 1] for i in range(1, num_layers))
        flops = 2 * B_pad * w_elems
        bytes_accessed = (B_pad * (d0 + d_last) * act_bytes
                          + w_elems * param_bytes + 4 * sum(dims_pad[1:]))

        out_pad = pl.pallas_call(
            functools.partial(_mlfpn_fused_kernel,
                              num_layers=num_layers,
                              out_dim=d_last,
                              compute_dtype=param_dtype),
            out_shape=jax.ShapeDtypeStruct((B_pad, d_last), fea.dtype),
            grid=(n_tiles,),
            in_specs=in_specs,
            out_specs=pl.BlockSpec((tb, d_last), lambda i: (i, 0)),
            compiler_params=pltpu.CompilerParams(**compiler_kwargs),
            cost_estimate=pl.CostEstimate(flops=int(flops), transcendentals=0,
                                          bytes_accessed=int(bytes_accessed)),
        )(x_p, *wb)

        return out_pad if B_pad == B else out_pad[:B]

    jitted = jax.jit(_fwd)

    def forward(fea):
        return jitted(fea, *flat_params)

    return forward


# ----------------------------------------------------------------------------
# Init (matches nn.Linear) + pure-JAX reference.
# ----------------------------------------------------------------------------
def init_mlfpn_fc_params(key, dims):
    """Returns list of (W_transposed, b) with W_transposed shape (d_in, d_out)."""
    params = []
    for i in range(len(dims) - 1):
        d_in, d_out = dims[i], dims[i + 1]
        key, kw, kb = jax.random.split(key, 3)
        bound = 1.0 / jnp.sqrt(d_in)
        w = jax.random.uniform(kw, (d_out, d_in), jnp.float32, -bound, bound)
        b = jax.random.uniform(kb, (d_out,), jnp.float32, -bound, bound)
        params.append((w.T, b))  # pre-transpose for x @ W.T
    return params


def mlfpn_fc_reference(fea, params):
    out = fea
    n = len(params)
    for i, (w_t, b) in enumerate(params):
        out = out @ w_t + b
        if i < n - 1:
            out = jnp.maximum(out, 0.0)
    return out


if __name__ == "__main__":
    key = jax.random.PRNGKey(0)
    k_in, k_params = jax.random.split(key)

    batch = 8
    dims = [32, 64, 48, 16]  # MLFPN_FC(dims): 32 -> 64 -> 48 -> 16

    fea = jax.random.normal(k_in, (batch, dims[0]), jnp.float32)
    params = init_mlfpn_fc_params(k_params, dims)
    ref = mlfpn_fc_reference(fea, params)

    # float32 path (exact vs reference)
    forward_f32 = make_mlfpn_fc(params, param_dtype=jnp.float32)
    out = jax.block_until_ready(forward_f32(fea))
    assert out.shape == (batch, dims[-1])
    assert jnp.allclose(out, ref, atol=1e-4, rtol=1e-4), "f32 mismatch vs reference"

    # bf16 weights/activations, f32 MXU accumulation (MXU-native path)
    forward_bf16 = make_mlfpn_fc(params, param_dtype=jnp.bfloat16)
    out_bf16 = jax.block_until_ready(forward_bf16(fea))
    assert out_bf16.shape == (batch, dims[-1])
    assert jnp.allclose(out_bf16, ref, atol=5e-2, rtol=5e-2), "bf16 mismatch vs reference"

    print("KERNEL_OK")
</pallas_src>

<mosaic_0001>
module attributes {stable_mosaic.version = 11 : i64} {
  func.func @_mlfpn_fused_kernel(%arg0: i32, %arg1: memref<8x32xf32, #tpu.memory_space<vmem>>, %arg2: memref<32x128xf32, #tpu.memory_space<vmem>>, %arg3: memref<1x128xf32, #tpu.memory_space<vmem>>, %arg4: memref<128x128xf32, #tpu.memory_space<vmem>>, %arg5: memref<1x128xf32, #tpu.memory_space<vmem>>, %arg6: memref<128x128xf32, #tpu.memory_space<vmem>>, %arg7: memref<1x128xf32, #tpu.memory_space<vmem>>, %arg8: memref<8x16xf32, #tpu.memory_space<vmem>>) attributes {dimension_semantics = [#tpu.dimension_semantics<parallel>], iteration_bounds = array<i64: 1>, scalar_prefetch = 0 : i64, scratch_operands = 0 : i64, tpu.core_type = #tpu.core_type<tc>, window_params = [{transform_indices = @transform_0, window_bounds = array<i64: 8, 32>}, {pipeline_mode = #tpu.pipeline_mode<synchronous>, transform_indices = @transform_1, window_bounds = array<i64: 32, 128>}, {pipeline_mode = #tpu.pipeline_mode<synchronous>, transform_indices = @transform_2, window_bounds = array<i64: 1, 128>}, {pipeline_mode = #tpu.pipeline_mode<synchronous>, transform_indices = @transform_3, window_bounds = array<i64: 128, 128>}, {pipeline_mode = #tpu.pipeline_mode<synchronous>, transform_indices = @transform_4, window_bounds = array<i64: 1, 128>}, {pipeline_mode = #tpu.pipeline_mode<synchronous>, transform_indices = @transform_5, window_bounds = array<i64: 128, 128>}, {pipeline_mode = #tpu.pipeline_mode<synchronous>, transform_indices = @transform_6, window_bounds = array<i64: 1, 128>}, {transform_indices = @transform_7, window_bounds = array<i64: 8, 16>}]} {
    %c0 = arith.constant 0 : index
    %c0_0 = arith.constant 0 : index
    %0 = vector.load %arg1[%c0, %c0_0] : memref<8x32xf32, #tpu.memory_space<vmem>>, vector<8x32xf32>
    %c0_1 = arith.constant 0 : index
    %c0_2 = arith.constant 0 : index
    %1 = vector.load %arg2[%c0_1, %c0_2] : memref<32x128xf32, #tpu.memory_space<vmem>>, vector<32x128xf32>
    %c0_3 = arith.constant 0 : index
    %c0_4 = arith.constant 0 : index
    %2 = vector.load %arg3[%c0_3, %c0_4] : memref<1x128xf32, #tpu.memory_space<vmem>>, vector<1x128xf32>
    %cst = arith.constant dense<0.000000e+00> : vector<8x128xf32>
    %3 = tpu.matmul %0, %1, %cst {dimension_numbers = #tpu.dot_dimension_numbers<[1], [0], [0], [1], [0, 0, 1, 1], [], []>} : vector<8x32xf32>, vector<32x128xf32>, vector<8x128xf32> -> vector<8x128xf32>
    %4 = vector.broadcast %2 : vector<1x128xf32> to vector<8x128xf32>
    %5 = arith.addf %3, %4 : vector<8x128xf32>
    %cst_5 = arith.constant 0.000000e+00 : f32
    %6 = vector.broadcast %cst_5 : f32 to vector<8x128xf32>
    %7 = arith.maximumf %5, %6 : vector<8x128xf32>
    %c0_6 = arith.constant 0 : index
    %c0_7 = arith.constant 0 : index
    %8 = vector.load %arg4[%c0_6, %c0_7] : memref<128x128xf32, #tpu.memory_space<vmem>>, vector<128x128xf32>
    %c0_8 = arith.constant 0 : index
    %c0_9 = arith.constant 0 : index
    %9 = vector.load %arg5[%c0_8, %c0_9] : memref<1x128xf32, #tpu.memory_space<vmem>>, vector<1x128xf32>
    %cst_10 = arith.constant dense<0.000000e+00> : vector<8x128xf32>
    %10 = tpu.matmul %7, %8, %cst_10 {dimension_numbers = #tpu.dot_dimension_numbers<[1], [0], [0], [1], [0, 0, 1, 1], [], []>} : vector<8x128xf32>, vector<128x128xf32>, vector<8x128xf32> -> vector<8x128xf32>
    %11 = vector.broadcast %9 : vector<1x128xf32> to vector<8x128xf32>
    %12 = arith.addf %10, %11 : vector<8x128xf32>
    %cst_11 = arith.constant 0.000000e+00 : f32
    %13 = vector.broadcast %cst_11 : f32 to vector<8x128xf32>
    %14 = arith.maximumf %12, %13 : vector<8x128xf32>
    %c0_12 = arith.constant 0 : index
    %c0_13 = arith.constant 0 : index
    %15 = vector.load %arg6[%c0_12, %c0_13] : memref<128x128xf32, #tpu.memory_space<vmem>>, vector<128x128xf32>
    %c0_14 = arith.constant 0 : index
    %c0_15 = arith.constant 0 : index
    %16 = vector.load %arg7[%c0_14, %c0_15] : memref<1x128xf32, #tpu.memory_space<vmem>>, vector<1x128xf32>
    %cst_16 = arith.constant dense<0.000000e+00> : vector<8x128xf32>
    %17 = tpu.matmul %14, %15, %cst_16 {dimension_numbers = #tpu.dot_dimension_numbers<[1], [0], [0], [1], [0, 0, 1, 1], [], []>} : vector<8x128xf32>, vector<128x128xf32>, vector<8x128xf32> -> vector<8x128xf32>
    %18 = vector.broadcast %16 : vector<1x128xf32> to vector<8x128xf32>
    %19 = arith.addf %17, %18 : vector<8x128xf32>
    %20 = vector.extract_strided_slice %19 {offsets = [0, 0], sizes = [8, 16], strides = [1, 1]} : vector<8x128xf32> to vector<8x16xf32>
    %c0_17 = arith.constant 0 : index
    %c0_18 = arith.constant 0 : index
    %21 = vector.load %arg8[%c0_17, %c0_18] : memref<8x16xf32, #tpu.memory_space<vmem>>, vector<8x16xf32>
    tpu.vector_store %arg8[%c0_17, %c0_18], %20 {strides = array<i32>} : memref<8x16xf32, #tpu.memory_space<vmem>>, vector<8x16xf32>,
    return
  }
  func.func @transform_0(%arg0: i32) -> (i32, i32) {
    %c0_i32 = arith.constant 0 : i32
    %c0_i32_0 = arith.constant 0 : i32
    return %arg0, %c0_i32 : i32, i32
  }
  func.func @transform_1(%arg0: i32) -> (i32, i32) {
    %c0_i32 = arith.constant 0 : i32
    %c0_i32_0 = arith.constant 0 : i32
    %c0_i32_1 = arith.constant 0 : i32
    return %c0_i32, %c0_i32_0 : i32, i32
  }
  func.func @transform_2(%arg0: i32) -> (i32, i32) {
    %c0_i32 = arith.constant 0 : i32
    %c0_i32_0 = arith.constant 0 : i32
    %c0_i32_1 = arith.constant 0 : i32
    return %c0_i32, %c0_i32_0 : i32, i32
  }
  func.func @transform_3(%arg0: i32) -> (i32, i32) {
    %c0_i32 = arith.constant 0 : i32
    %c0_i32_0 = arith.constant 0 : i32
    %c0_i32_1 = arith.constant 0 : i32
    return %c0_i32, %c0_i32_0 : i32, i32
  }
  func.func @transform_4(%arg0: i32) -> (i32, i32) {
    %c0_i32 = arith.constant 0 : i32
    %c0_i32_0 = arith.constant 0 : i32
    %c0_i32_1 = arith.constant 0 : i32
    return %c0_i32, %c0_i32_0 : i32, i32
  }
  func.func @transform_5(%arg0: i32) -> (i32, i32) {
    %c0_i32 = arith.constant 0 : i32
    %c0_i32_0 = arith.constant 0 : i32
    %c0_i32_1 = arith.constant 0 : i32
    return %c0_i32, %c0_i32_0 : i32, i32
  }
  func.func @transform_6(%arg0: i32) -> (i32, i32) {
    %c0_i32 = arith.constant 0 : i32
    %c0_i32_0 = arith.constant 0 : i32
    %c0_i32_1 = arith.constant 0 : i32
    return %c0_i32, %c0_i32_0 : i32, i32
  }
  func.func @transform_7(%arg0: i32) -> (i32, i32) {
    %c0_i32 = arith.constant 0 : i32
    %c0_i32_0 = arith.constant 0 : i32
    return %arg0, %c0_i32 : i32, i32
  }
}

</mosaic_0001>

<bundles_post_ra>
// kernel: _fwd.1
= control target key start
LH: loop header
LB: loop body
LE: loop exit
PB: predicated region body
PF: predicated region fallthrough
CT: control target
= control target key end

     0   :  { %12 = vsyncpa [#allocation3], 0  ;;  %s738_s0 = inlined_call_operand.hbm [shape: f32[8,32], index: 0, kind: input, shape index: {}]   ;;  %s739_s1 = inlined_call_operand.hbm [shape: f32[32,128], index: 1, kind: input, shape index: {}]   ;;  %s740_s2 = inlined_call_operand.vmem [shape: f32[1,128], index: 2, kind: input, shape index: {}]   ;;  %s741_s3 = inlined_call_operand.hbm [shape: f32[128,128], index: 3, kind: input, shape index: {}]   ;;  %s742_s4 = inlined_call_operand.vmem [shape: f32[1,128], index: 4, kind: input, shape index: {}]   ;;  %s743_s5 = inlined_call_operand.hbm [shape: f32[128,128], index: 5, kind: input, shape index: {}]   ;;  %s744_s6 = inlined_call_operand.vmem [shape: f32[1,128], index: 6, kind: input, shape index: {}]   ;;  %s745_s7 = inlined_call_operand.hbm [shape: f32[8,16], index: 7, kind: output, shape index: {}]  }
   0x1   :  { %13 = vsyncpa [#allocation6], 0 }
   0x2   :  { %14 = vsyncpa [#allocation9], 0 }
   0x3   :  { %15 = vsyncpa [#allocation4], 0  ;;  %s614_s24 = smov [#allocation5]  }
   0x4   :  { %s31_s25 = sshll.u32 %s614_s24, 4  ;;  %s32_s25 = int_to_ptr.vmem [resolvable:$true] %s31_s25 }
   0x5   :  { %s514_s26 = scalar_lea.vmem %s32_s25, 512  ;;  %p519_p1 = scmp.lt.s32.totalorder %s32_s25, %s32_s25 }
   0x6   :  { %p515_p0 = scmp.ne.s32.totalorder %s32_s25, %s514_s26  ;;  %p520_p2 = scmp.lt.s32.totalorder %s514_s26, %s514_s26 }
   0x8   :  { %p521_p3 = por %p520_p2, %p519_p1 }
   0xa   :  { %p522_p4 = pnand %p521_p3, %p515_p0 }
   0xc   :  { %525 = shalt.err (!%p522_p4)
}
   0xd   :  { %s615_s27 = smov 128   ;;  %s616_s28 = smov 8  }
   0xe   :  { %37 = dma.hbm_to_vmem [thread:$0]  %s739_s1, 512, %s32_s25, [#allocation6], %s615_s27, %s615_s27, %s616_s28  }
   0xf   :  { %s617_s8 = smov [#allocation2]   ;;  %s618_s10 = smov [#allocation7]  }
  0x10   :  { %s22_s9 = sshll.u32 %s617_s8, 4  ;;  %s45_s11 = sshll.u32 %s618_s10, 4  ;;  %s23_s9 = int_to_ptr.vmem [resolvable:$true] %s22_s9  ;;  %s46_s11 = int_to_ptr.vmem [resolvable:$true] %s45_s11 }
  0x11   :  { %s534_s12 = scalar_lea.vmem %s23_s9, 128  ;;  %p539_p6 = scmp.lt.s32.totalorder %s23_s9, %s23_s9 }
  0x12   :  { %p535_p5 = scmp.ne.s32.totalorder %s23_s9, %s534_s12  ;;  %p540_p7 = scmp.lt.s32.totalorder %s534_s12, %s534_s12 }
  0x14   :  { %p541_p8 = por %p540_p7, %p539_p6 }
  0x16   :  { %p542_p9 = pnand %p541_p8, %p535_p5 }
  0x18   :  { %545 = shalt.err (!%p542_p9)
}
  0x19   :  { %25 = dma.hbm_to_vmem [thread:$0]  %s738_s0, 128, %s23_s9, [#allocation3]  }
  0x1a   :  { %s554_s15 = scalar_lea.vmem %s46_s11, 2048  ;;  %p559_p11 = scmp.lt.s32.totalorder %s46_s11, %s46_s11 }
  0x1b   :  { %p555_p10 = scmp.ne.s32.totalorder %s46_s11, %s554_s15  ;;  %p560_p12 = scmp.lt.s32.totalorder %s554_s15, %s554_s15 }
  0x1d   :  { %p561_p13 = por %p560_p12, %p559_p11 }
  0x1f   :  { %p562_p0 = pnand %p561_p13, %p555_p10 }
  0x21   :  { %565 = shalt.err (!%p562_p0)
}
  0x22   :  { %51 = dma.hbm_to_vmem [thread:$0]  %s741_s3, 2048, %s46_s11, [#allocation6], %s615_s27, %s615_s27, %s616_s28  }
  0x23   :  { %s619_s17 = smov [#allocation8]  }
  0x24   :  { %s59_s18 = sshll.u32 %s619_s17, 4  ;;  %s60_s18 = int_to_ptr.vmem [resolvable:$true] %s59_s18 }
  0x25   :  { %s574_s19 = scalar_lea.vmem %s60_s18, 2048  ;;  %p579_p2 = scmp.lt.s32.totalorder %s60_s18, %s60_s18 }
  0x26   :  { %p575_p1 = scmp.ne.s32.totalorder %s60_s18, %s574_s19  ;;  %p580_p3 = scmp.lt.s32.totalorder %s574_s19, %s574_s19 }
  0x28   :  { %p581_p4 = por %p580_p3, %p579_p2 }
  0x2a   :  { %p582_p5 = pnand %p581_p4, %p575_p1 }
  0x2c   :  { %585 = shalt.err (!%p582_p5)
}
  0x2d   :  { %65 = dma.hbm_to_vmem [thread:$0]  %s743_s5, 2048, %s60_s18, [#allocation9], %s615_s27, %s615_s27, %s616_s28  }
  0x2e   :  { %606 = dma.done.wait [#allocation3], 128  }
  0x2f   :  { %607 = vsyncadd [#allocation3], 4294967168 }
  0x30   :  { %608 = dma.done.wait [#allocation6], 2560  }
  0x31   :  { %609 = vsyncadd [#allocation6], 4294964736 }
  0x32   :  { %610 = dma.done.wait [#allocation9], 2048  }
  0x33   :  { %611 = vsyncadd [#allocation9], 4294965248  ;;  %v620_v0 = vmov 0.0   ;;  %vm621_vm0 = vmmov 0   ;;  %v84_v1 = vld [vmem:[#allocation5 + $0x18] sm:$0xff]  ;;  %v83_v2 = vld [vmem:[#allocation5 + $0x10] sm:$0xff] }
  0x34   :  { %416 = vmatprep.subr.mxu0 %v620_v0  ;;  %424 = vmatprep.mubr.msk.f32.mxu0 %vm621_vm0, %v620_v0  ;;  %v182_v3 = vld [vmem:[#allocation7 + $0x78] sm:$0xff]  ;;  %v82_v4 = vld [vmem:[#allocation5 + $0x8] sm:$0xff]  ;;  %v181_v5 = vld [vmem:[#allocation7 + $0x70] sm:$0xff]  ;;  %vm92_vm1 = vcmask 261120   ;;  %s622_s24 = smov [#allocation10]   ;;  %vm354_vm2 = vcmask 130048  }
  0x35   :  { %427 = vmatprep.subr.mxu1 %v620_v0  ;;  %459 = vmatprep.mubr.msk.f32.mxu1 %vm621_vm0, %v620_v0  ;;  %v180_v6 = vld [vmem:[#allocation7 + $0x68] sm:$0xff]  ;;  %v81_v7 = vld [vmem:[#allocation5] sm:$0xff]  ;;  %v80_v8 = vld [vmem:[#allocation2] sm:$0xff]  ;;  %s362_s25 = sshll.u32 %s622_s24, 4  ;;  %s363_s25 = int_to_ptr.vmem [resolvable:$true] %s362_s25 }
  0x36   :  { %417 = vmatpush3.msra.mxu0 %v84_v1  ;;  %428 = vmatpush3.msra.mxu1 %v182_v3  ;;  %v179_v9 = vld [vmem:[#allocation7 + $0x60] sm:$0xff]  ;;  %v178_v10 = vld [vmem:[#allocation7 + $0x58] sm:$0xff]  ;;  %v177_v11 = vld [vmem:[#allocation7 + $0x50] sm:$0xff]  ;;  %s586_s26 = scalar_lea.vmem %s363_s25, 128  ;;  %p591_p7 = scmp.lt.s32.totalorder %s363_s25, %s363_s25 }
  0x37   :  { %418 = vmatprep.subr.mxu0 %v620_v0  ;;  %429 = vmatprep.subr.mxu1 %v620_v0  ;;  %v176_v12 = vld [vmem:[#allocation7 + $0x48] sm:$0xff]  ;;  %v175_v13 = vld [vmem:[#allocation7 + $0x40] sm:$0xff]  ;;  %v174_v14 = vld [vmem:[#allocation7 + $0x38] sm:$0xff]  ;;  %p587_p6 = scmp.ne.s32.totalorder %s363_s25, %s586_s26  ;;  %p592_p8 = scmp.lt.s32.totalorder %s586_s26, %s586_s26 }
  0x38   :  { %419 = vmatpush3.msra.mxu0 %v83_v2  ;;  %430 = vmatpush3.msra.mxu1 %v181_v5  ;;  %v173_v15 = vld [vmem:[#allocation7 + $0x30] sm:$0xff]  ;;  %v172_v16 = vld [vmem:[#allocation7 + $0x28] sm:$0xff]  ;;  %v171_v17 = vld [vmem:[#allocation7 + $0x20] sm:$0xff] }
  0x39   :  { %420 = vmatprep.subr.mxu0 %v620_v0  ;;  %431 = vmatprep.subr.mxu1 %v620_v0  ;;  %v170_v18 = vld [vmem:[#allocation7 + $0x18] sm:$0xff]  ;;  %v169_v19 = vld [vmem:[#allocation7 + $0x10] sm:$0xff]  ;;  %v168_v20 = vld [vmem:[#allocation7 + $0x8] sm:$0xff]  ;;  %p593_p9 = por %p592_p8, %p591_p7 }
  0x3a   :  { %421 = vmatpush3.msra.mxu0 %v82_v4  ;;  %432 = vmatpush3.msra.mxu1 %v180_v6  ;;  %v167_v21 = vld [vmem:[#allocation7] sm:$0xff]  ;;  %v276_v22 = vld [vmem:[#allocation8 + $0x78] sm:$0xff]  ;;  %v275_v23 = vld [vmem:[#allocation8 + $0x70] sm:$0xff] }
  0x3b   :  { %422 = vmatprep.subr.mxu0 %v620_v0  ;;  %433 = vmatprep.subr.mxu1 %v620_v0  ;;  %v274_v24 = vld [vmem:[#allocation8 + $0x68] sm:$0xff]  ;;  %v273_v25 = vld [vmem:[#allocation8 + $0x60] sm:$0xff]  ;;  %v272_v26 = vld [vmem:[#allocation8 + $0x58] sm:$0xff]  ;;  %p594_p10 = pnand %p593_p9, %p587_p6 }
  0x3c   :  { %423 = vmatpush3.msra.mxu0 %v81_v7  ;;  %434 = vmatpush3.msra.mxu1 %v179_v9  ;;  %v271_v27 = vld [vmem:[#allocation8 + $0x50] sm:$0xff]  ;;  %v270_v28 = vld [vmem:[#allocation8 + $0x48] sm:$0xff]  ;;  %v269_v29 = vld [vmem:[#allocation8 + $0x40] sm:$0xff] }
  0x3d   :  { %425 = vmatmul.mubr.msk.f32.vlgmr.msra.gmra.mxu0 %vm92_vm1, %v80_v8  ;;  %435 = vmatprep.subr.mxu1 %v620_v0  ;;  %v268_v30 = vld [vmem:[#allocation8 + $0x38] sm:$0xff]  ;;  %v267_v31 = vld [vmem:[#allocation8 + $0x30] sm:$0xff]  ;;  %v266_v32 = vld [vmem:[#allocation8 + $0x28] sm:$0xff] }
  0x3e   :  { %462 = vmatprep.subr.mxu0 %v620_v0  ;;  %436 = vmatpush3.msra.mxu1 %v178_v10  ;;  %v265_v33 = vld [vmem:[#allocation8 + $0x20] sm:$0xff]  ;;  %v264_v34 = vld [vmem:[#allocation8 + $0x18] sm:$0xff]  ;;  %v263_v40 = vld [vmem:[#allocation8 + $0x10] sm:$0xff] }
  0x3f   :  { %494 = vmatprep.mubr.msk.f32.mxu0 %vm621_vm0, %v620_v0  ;;  %437 = vmatprep.subr.mxu1 %v620_v0  ;;  %v373_v35 = vld [vmem:[%s740_s2] ss:$0 sm:$0xff]  ;;  %v262_v41 = vld [vmem:[#allocation8 + $0x8] sm:$0xff]  ;;  %v261_v42 = vld [vmem:[#allocation8] sm:$0xff] }
  0x40   :  { %438 = vmatpush3.msra.mxu1 %v177_v11  ;;  %463 = vmatpush3.msra.mxu0 %v276_v22  ;;  %v375_v43 = vld [vmem:[%s742_s4] ss:$0 sm:$0xff] }
  0x41   :  { %439 = vmatprep.subr.mxu1 %v620_v0  ;;  %464 = vmatprep.subr.mxu0 %v620_v0  ;;  %v376_v48 = vld [vmem:[%s744_s6] ss:$0 sm:$0xff] }
  0x42   :  { %440 = vmatpush3.msra.mxu1 %v176_v12  ;;  %465 = vmatpush3.msra.mxu0 %v275_v23 }
  0x43   :  { %441 = vmatprep.subr.mxu1 %v620_v0  ;;  %466 = vmatprep.subr.mxu0 %v620_v0 }
  0x44   :  { %442 = vmatpush3.msra.mxu1 %v175_v13  ;;  %467 = vmatpush3.msra.mxu0 %v274_v24 }
  0x45   :  { %443 = vmatprep.subr.mxu1 %v620_v0  ;;  %468 = vmatprep.subr.mxu0 %v620_v0 }
  0x46   :  { %444 = vmatpush3.msra.mxu1 %v174_v14  ;;  %469 = vmatpush3.msra.mxu0 %v273_v25 }
  0x47   :  { %445 = vmatprep.subr.mxu1 %v620_v0  ;;  %470 = vmatprep.subr.mxu0 %v620_v0 }
  0x48   :  { %446 = vmatpush3.msra.mxu1 %v173_v15  ;;  %471 = vmatpush3.msra.mxu0 %v272_v26 }
  0x49   :  { %447 = vmatprep.subr.mxu1 %v620_v0  ;;  %472 = vmatprep.subr.mxu0 %v620_v0 }
  0x4a   :  { %448 = vmatpush3.msra.mxu1 %v172_v16  ;;  %473 = vmatpush3.msra.mxu0 %v271_v27 }
  0x4b   :  { %449 = vmatprep.subr.mxu1 %v620_v0  ;;  %474 = vmatprep.subr.mxu0 %v620_v0 }
  0x4c   :  { %450 = vmatpush3.msra.mxu1 %v171_v17  ;;  %475 = vmatpush3.msra.mxu0 %v270_v28 }
  0x4d   :  { %451 = vmatprep.subr.mxu1 %v620_v0  ;;  %476 = vmatprep.subr.mxu0 %v620_v0 }
  0x4e   :  { %452 = vmatpush3.msra.mxu1 %v170_v18  ;;  %477 = vmatpush3.msra.mxu0 %v269_v29 }
  0x4f   :  { %453 = vmatprep.subr.mxu1 %v620_v0  ;;  %478 = vmatprep.subr.mxu0 %v620_v0 }
  0x50   :  { %454 = vmatpush3.msra.mxu1 %v169_v19  ;;  %479 = vmatpush3.msra.mxu0 %v268_v30 }
  0x51   :  { %455 = vmatprep.subr.mxu1 %v620_v0  ;;  %480 = vmatprep.subr.mxu0 %v620_v0 }
  0x52   :  { %456 = vmatpush3.msra.mxu1 %v168_v20  ;;  %481 = vmatpush3.msra.mxu0 %v267_v31 }
  0x53   :  { %457 = vmatprep.subr.mxu1 %v620_v0  ;;  %482 = vmatprep.subr.mxu0 %v620_v0 }
  0x54   :  { %458 = vmatpush3.msra.mxu1 %v167_v21  ;;  %483 = vmatpush3.msra.mxu0 %v266_v32 }
  0x55   :  { %484 = vmatprep.subr.mxu0 %v620_v0 }
  0x56   :  { %485 = vmatpush3.msra.mxu0 %v265_v33 }
  0x57   :  { %486 = vmatprep.subr.mxu0 %v620_v0 }
  0x58   :  { %487 = vmatpush3.msra.mxu0 %v264_v34 }
  0x59   :  { %488 = vmatprep.subr.mxu0 %v620_v0 }
  0x5a   :  { %489 = vmatpush3.msra.mxu0 %v263_v40 }
  0x5b   :  { %490 = vmatprep.subr.mxu0 %v620_v0 }
  0x5c   :  { %491 = vmatpush3.msra.mxu0 %v262_v41 }
  0x5d   :  { %492 = vmatprep.subr.mxu0 %v620_v0 }
  0x5e   :  { %493 = vmatpush3.msra.mxu0 %v261_v42 }
  0xfd   :  { %v162_v36 = vpop.f32.mrf.mxu0 }
  0xfe   :  { %v163_v37 = vadd.f32 %v373_v35, %v162_v36 }
  0xff   :  { %v426_v38 = vpop.f32.mrf.mxu0 }
 0x100   :  { %v166_v39 = vmax.f32 %v163_v37, 0.0 }
 0x102   :  { %460 = vmatmul.mubr.f32.vlgmr.msra.gmra.mxu1 %v166_v39 }
 0x1c2   :  { %v256_v44 = vpop.f32.mrf.mxu1 }
 0x1c3   :  { %v257_v45 = vadd.f32 %v375_v43, %v256_v44 }
 0x1c4   :  { %v461_v46 = vpop.f32.mrf.mxu1 }
 0x1c5   :  { %v260_v47 = vmax.f32 %v257_v45, 0.0 }
 0x1c7   :  { %495 = vmatmul.mubr.f32.vlgmr.msra.gmra.mxu0 %v260_v47 }
 0x287   :  { %v350_v49 = vpop.f32.mrf.mxu0 }
 0x288   :  { %v351_v50 = vadd.f32 %v376_v48, %v350_v49 }
 0x289   :  { %v496_v51 = vpop.f32.mrf.mxu0 }
 0x28a   :  { %355 = vst.msk [vmem:[#allocation10] sm:$0xff] %vm354_vm2, %v351_v50 }
 0x28b   :  { %597 = shalt.err (!%p594_p10)
}
 0x28c   :  { %365 = dma.vmem_to_hbm [thread:$0]  %s363_s25, 128, %s745_s7, [#allocation4]  }
 0x28d   :  { %612 = dma.done.wait [#allocation4], 128  }
 0x28e   :  { %613 = vsyncadd [#allocation4], 4294967168 }
 0x28f   :  { %369 = vsyncpa [#allocation3], 1 }
 0x290   :  { %370 = vsyncpa [#allocation6], 1 }
 0x291   :  { %371 = vsyncpa [#allocation9], 1 }
 0x292   :  { %372 = vsyncpa [#allocation4], 1 }

</bundles_post_ra>
